<compile_context>
chip_gen: v7x
topology: tpu7x:2x2x1
jax: 0.10.0
libtpu: 0.0.40
codegen_flags: <defaults>
</compile_context>

<pallas_src>
import jax
import jax.numpy as jnp
from jax.experimental import pallas as pl
from jax.experimental.pallas import tpu as pltpu


def _attention_mlp_kernel(v_ref, w1_ref, b1_ref, w2_ref, b2_ref, o_ref):
    # v_ref: (BT, S, D) -- BT bags per grid step.
    v = v_ref[...].astype(jnp.float32)

    # softmax over the size-1 dim of the (S, 1) attention score is exactly 1.0,
    # so the attention-weighted sum over instances reduces to a plain sum.
    pooled = jnp.sum(v, axis=1)                                        # (BT, D)

    # fc1 -> relu -> fc2 on the MXU (batched over BT bags).
    h = jnp.dot(pooled, w1_ref[...],
                preferred_element_type=jnp.float32) + b1_ref[...]      # (BT, H)
    h = jnp.maximum(h, 0.0)
    out = jnp.dot(h, w2_ref[...],
                  preferred_element_type=jnp.float32) + b2_ref[...]    # (BT, Cp)
    o_ref[...] = out.astype(o_ref.dtype)


def attention_mlp_forward(k, v, params, *, bag_tile=8):
    """Forward pass.

    k: (S, att_size) or (B, S, att_size)   -- accepted for API fidelity; it has
       provably zero effect on the output (softmax over a size-1 axis == 1.0),
       so it is not passed to the kernel.
    v: (S, input_size) or (B, S, input_size)
    Returns (num_classes,) for 2-D inputs, (B, num_classes) for 3-D inputs.
    """
    del k  # mathematically dead w.r.t. the output (see module semantics above)

    single = v.ndim == 2
    if single:
        v = v[None]

    w1, b1, w2, b2 = params["w1"], params["b1"], params["w2"], params["b2"]
    B, S, D = v.shape
    H = w1.shape[1]
    C = w2.shape[1]

    # Lane-dense output: pad num_classes up to a multiple of 128.
    C_pad = ((C + 127) // 128) * 128
    w2p = jnp.pad(w2, ((0, 0), (0, C_pad - C)))
    b2p = jnp.pad(b2, ((0, 0), (0, C_pad - C)))

    # Pad the batch up to a multiple of the bag tile.
    nb = pl.cdiv(B, bag_tile)
    B_pad = nb * bag_tile
    if B_pad != B:
        v = jnp.pad(v, ((0, B_pad - B), (0, 0), (0, 0)))

    out = pl.pallas_call(
        _attention_mlp_kernel,
        out_shape=jax.ShapeDtypeStruct((B_pad, C_pad), jnp.float32),
        grid=(nb,),
        in_specs=[
            pl.BlockSpec((bag_tile, S, D), lambda i: (i, 0, 0)),   # v tile
            pl.BlockSpec((D, H), lambda i: (0, 0)),                # w1 (resident)
            pl.BlockSpec((1, H), lambda i: (0, 0)),                # b1 (resident)
            pl.BlockSpec((H, C_pad), lambda i: (0, 0)),            # w2 (resident)
            pl.BlockSpec((1, C_pad), lambda i: (0, 0)),            # b2 (resident)
        ],
        out_specs=pl.BlockSpec((bag_tile, C_pad), lambda i: (i, 0)),
        compiler_params=pltpu.CompilerParams(
            dimension_semantics=("parallel",)),                    # v7x: 2 TCs
    )(v, w1, b1, w2p, b2p)

    out = out[:B, :C]
    return out[0] if single else out


def init_params(key, att_size, input_size, hidden_size, num_classes):
    """Deterministic init, PyTorch nn.Linear-style uniform(-1/sqrt(in), 1/sqrt(in)).
    Weights stored pre-transposed as (in, out); biases kept 2-D (1, out)."""
    ks = jax.random.split(key, 6)

    def lin(kw, kb, fan_in, fan_out):
        bound = 1.0 / jnp.sqrt(jnp.float32(fan_in))
        w = jax.random.uniform(kw, (fan_in, fan_out), jnp.float32, -bound, bound)
        b = jax.random.uniform(kb, (1, fan_out), jnp.float32, -bound, bound)
        return w, b

    wa, ba = lin(ks[0], ks[1], att_size, 1)
    w1, b1 = lin(ks[2], ks[3], input_size, hidden_size)
    w2, b2 = lin(ks[4], ks[5], hidden_size, num_classes)
    return {"wa": wa, "ba": ba, "w1": w1, "b1": b1, "w2": w2, "b2": b2}


def _reference_forward_single(k, v, p):
    # Faithful pure-JAX reference of the torch module, attention branch included.
    score = k @ p["wa"] + p["ba"]               # (S, 1)
    alpha = jax.nn.softmax(score, axis=1)       # softmax over size-1 axis == 1.0
    inputs = (v * alpha).sum(axis=0)            # (D,)
    h = jnp.maximum(inputs @ p["w1"] + p["b1"][0], 0.0)
    return h @ p["w2"] + p["b2"][0]


if __name__ == "__main__":
    B, S = 64, 8
    att_size, input_size, hidden_size, num_classes = 16, 32, 64, 10

    key = jax.random.PRNGKey(0)
    kk, kv, kp = jax.random.split(key, 3)
    k = jax.random.normal(kk, (B, S, att_size), jnp.float32)
    v = jax.random.normal(kv, (B, S, input_size), jnp.float32)
    params = init_params(kp, att_size, input_size, hidden_size, num_classes)

    # Batched path.
    out = attention_mlp_forward(k, v, params, bag_tile=8)
    out = jax.block_until_ready(out)
    ref = jax.vmap(_reference_forward_single, in_axes=(0, 0, None))(k, v, params)
    assert out.shape == (B, num_classes)
    assert jnp.allclose(out, ref, atol=1e-5, rtol=1e-5), (out, ref)

    # Single-bag path (matches the original 2-D module interface).
    out1 = jax.block_until_ready(attention_mlp_forward(k[0], v[0], params))
    ref1 = _reference_forward_single(k[0], v[0], params)
    assert out1.shape == (num_classes,)
    assert jnp.allclose(out1, ref1, atol=1e-5, rtol=1e-5), (out1, ref1)

    print("KERNEL_OK")
</pallas_src>

<mosaic_0001>
module attributes {stable_mosaic.version = 11 : i64} {
  func.func @_attention_mlp_kernel(%arg0: i32, %arg1: memref<8x8x32xf32, #tpu.memory_space<vmem>>, %arg2: memref<32x64xf32, #tpu.memory_space<vmem>>, %arg3: memref<1x64xf32, #tpu.memory_space<vmem>>, %arg4: memref<64x128xf32, #tpu.memory_space<vmem>>, %arg5: memref<1x128xf32, #tpu.memory_space<vmem>>, %arg6: memref<8x128xf32, #tpu.memory_space<vmem>>) attributes {dimension_semantics = [#tpu.dimension_semantics<parallel>], iteration_bounds = array<i64: 8>, scalar_prefetch = 0 : i64, scratch_operands = 0 : i64, tpu.core_type = #tpu.core_type<tc>, window_params = [{transform_indices = @transform_0, window_bounds = array<i64: 8, 8, 32>}, {pipeline_mode = #tpu.pipeline_mode<synchronous>, transform_indices = @transform_1, window_bounds = array<i64: 32, 64>}, {pipeline_mode = #tpu.pipeline_mode<synchronous>, transform_indices = @transform_2, window_bounds = array<i64: 1, 64>}, {pipeline_mode = #tpu.pipeline_mode<synchronous>, transform_indices = @transform_3, window_bounds = array<i64: 64, 128>}, {pipeline_mode = #tpu.pipeline_mode<synchronous>, transform_indices = @transform_4, window_bounds = array<i64: 1, 128>}, {transform_indices = @transform_5, window_bounds = array<i64: 8, 128>}]} {
    %c0 = arith.constant 0 : index
    %c0_0 = arith.constant 0 : index
    %c0_1 = arith.constant 0 : index
    %0 = vector.load %arg1[%c0, %c0_0, %c0_1] : memref<8x8x32xf32, #tpu.memory_space<vmem>>, vector<8x8x32xf32>
    %cst = arith.constant dense<0.000000e+00> : vector<8x32xf32>
    %1 = vector.multi_reduction <add>, %0, %cst [1] : vector<8x8x32xf32> to vector<8x32xf32>
    %c0_2 = arith.constant 0 : index
    %c0_3 = arith.constant 0 : index
    %2 = vector.load %arg2[%c0_2, %c0_3] : memref<32x64xf32, #tpu.memory_space<vmem>>, vector<32x64xf32>
    %cst_4 = arith.constant dense<0.000000e+00> : vector<8x64xf32>
    %3 = tpu.matmul %1, %2, %cst_4 {dimension_numbers = #tpu.dot_dimension_numbers<[1], [0], [0], [1], [0, 0, 1, 1], [], []>} : vector<8x32xf32>, vector<32x64xf32>, vector<8x64xf32> -> vector<8x64xf32>
    %c0_5 = arith.constant 0 : index
    %c0_6 = arith.constant 0 : index
    %4 = vector.load %arg3[%c0_5, %c0_6] : memref<1x64xf32, #tpu.memory_space<vmem>>, vector<1x64xf32>
    %5 = vector.broadcast %4 : vector<1x64xf32> to vector<8x64xf32>
    %6 = arith.addf %3, %5 : vector<8x64xf32>
    %cst_7 = arith.constant 0.000000e+00 : f32
    %7 = vector.broadcast %cst_7 : f32 to vector<8x64xf32>
    %8 = arith.maximumf %6, %7 : vector<8x64xf32>
    %c0_8 = arith.constant 0 : index
    %c0_9 = arith.constant 0 : index
    %9 = vector.load %arg4[%c0_8, %c0_9] : memref<64x128xf32, #tpu.memory_space<vmem>>, vector<64x128xf32>
    %cst_10 = arith.constant dense<0.000000e+00> : vector<8x128xf32>
    %10 = tpu.matmul %8, %9, %cst_10 {dimension_numbers = #tpu.dot_dimension_numbers<[1], [0], [0], [1], [0, 0, 1, 1], [], []>} : vector<8x64xf32>, vector<64x128xf32>, vector<8x128xf32> -> vector<8x128xf32>
    %c0_11 = arith.constant 0 : index
    %c0_12 = arith.constant 0 : index
    %11 = vector.load %arg5[%c0_11, %c0_12] : memref<1x128xf32, #tpu.memory_space<vmem>>, vector<1x128xf32>
    %12 = vector.broadcast %11 : vector<1x128xf32> to vector<8x128xf32>
    %13 = arith.addf %10, %12 : vector<8x128xf32>
    %c0_13 = arith.constant 0 : index
    %c0_14 = arith.constant 0 : index
    %14 = vector.load %arg6[%c0_13, %c0_14] : memref<8x128xf32, #tpu.memory_space<vmem>>, vector<8x128xf32>
    tpu.vector_store %arg6[%c0_13, %c0_14], %13 {strides = array<i32>} : memref<8x128xf32, #tpu.memory_space<vmem>>, vector<8x128xf32>,
    return
  }
  func.func @transform_0(%arg0: i32) -> (i32, i32, i32) {
    %c0_i32 = arith.constant 0 : i32
    %c0_i32_0 = arith.constant 0 : i32
    %c0_i32_1 = arith.constant 0 : i32
    return %arg0, %c0_i32, %c0_i32_0 : i32, i32, i32
  }
  func.func @transform_1(%arg0: i32) -> (i32, i32) {
    %c0_i32 = arith.constant 0 : i32
    %c0_i32_0 = arith.constant 0 : i32
    %c0_i32_1 = arith.constant 0 : i32
    return %c0_i32, %c0_i32_0 : i32, i32
  }
  func.func @transform_2(%arg0: i32) -> (i32, i32) {
    %c0_i32 = arith.constant 0 : i32
    %c0_i32_0 = arith.constant 0 : i32
    %c0_i32_1 = arith.constant 0 : i32
    return %c0_i32, %c0_i32_0 : i32, i32
  }
  func.func @transform_3(%arg0: i32) -> (i32, i32) {
    %c0_i32 = arith.constant 0 : i32
    %c0_i32_0 = arith.constant 0 : i32
    %c0_i32_1 = arith.constant 0 : i32
    return %c0_i32, %c0_i32_0 : i32, i32
  }
  func.func @transform_4(%arg0: i32) -> (i32, i32) {
    %c0_i32 = arith.constant 0 : i32
    %c0_i32_0 = arith.constant 0 : i32
    %c0_i32_1 = arith.constant 0 : i32
    return %c0_i32, %c0_i32_0 : i32, i32
  }
  func.func @transform_5(%arg0: i32) -> (i32, i32) {
    %c0_i32 = arith.constant 0 : i32
    %c0_i32_0 = arith.constant 0 : i32
    return %arg0, %c0_i32 : i32, i32
  }
}

</mosaic_0001>

<bundles_post_ra>
// kernel: tpu_custom_call.1
= control target key start
LH: loop header
LB: loop body
LE: loop exit
PB: predicated region body
PF: predicated region fallthrough
CT: control target
= control target key end

     0   :  { %10 = vsyncpa [#allocation3], 0  ;;  %s935_s0 = inlined_call_operand.vmem [shape: f32[64,8,32], index: 0, kind: input, shape index: {}]   ;;  %s936_s1 = inlined_call_operand.vmem [shape: f32[32,64], index: 1, kind: input, shape index: {}]   ;;  %s937_s2 = inlined_call_operand.vmem [shape: f32[1,64], index: 2, kind: input, shape index: {}]   ;;  %s938_s3 = inlined_call_operand.vmem [shape: f32[64,128], index: 3, kind: input, shape index: {}]   ;;  %s939_s4 = inlined_call_operand.vmem [shape: f32[1,128], index: 4, kind: input, shape index: {}]   ;;  %s940_s5 = inlined_call_operand.hbm [shape: f32[64,128], index: 5, kind: output, shape index: {}]  }
   0x1   :  { %12 = vsyncpa [#allocation3 + $0x1], 0  ;;  %s776_s18 = smov 0   ;;  %s778_s19 = smov 0  }
   0x2   :  { %s780_s20 = smov 0   ;;  %s782_s21 = smov 0  }
   0x3 LB: > { %s797_s22 = sadd.s32 4294967295, %s740_s21   ;;  %s559_s23 = sadd.s32 4294967294, %s740_s21   ;;  %s740_s21 = sphi %s782_s21, %s946_s21   ;;  %s736_s20 = sphi %s780_s20, %s945_s20   ;;  %s732_s19 = sphi %s778_s19, %s944_s19   ;;  %s728_s18 = sphi %s776_s18, %s943_s18  }
   0x4   : > { %s801_s24 = sadd.s32 1, %s740_s21   ;;  %s135_s25 = sadd.s32 1, %s736_s20 }
   0x5   : > { %s132_s26 = ssub.s32 %s740_s21, %s801_s24  ;;  %p145_p0 = scmp.ne.s32.totalorder %s736_s20, %s732_s19 }
   0x6   : > { %p133_p1 = scmp.eq.s32.totalorder %s132_s26, 0  ;;  %p146_p2 = scmp.eq.s32.totalorder %s797_s22, 7 }
   0x7   : > { %p151_p3 = scmp.ne.s32.totalorder %s732_s19, %s728_s18  ;;  %p152_p4 = scmp.eq.s32.totalorder %s559_s23, 7 }
   0x8   : > { %s812_s27 = scalar_select %p133_p1, %s736_s20, %s135_s25  }
   0x9   : > { %p814_p5 = por %p146_p2, %p145_p0  ;;  %p818_p6 = por %p152_p4, %p151_p3 }
   0xa   : > { %p562_p7 = scmp.ge.s32.totalorder %s740_s21, 1  ;;  %p191_p8 = scmp.lt.s32.totalorder %s740_s21, 9 }
   0xc   : > { %p192_p9 = pnand %p562_p7, %p191_p8 }
   0xd   : > { %v290_v0 = vld [vmem:[%s936_s1] sm:$0xff] (!%p192_p9)  ;;  %v291_v1 = vld [vmem:[%s936_s1 + $0x8] sm:$0xff] (!%p192_p9)  ;;  %v292_v2 = vld [vmem:[%s936_s1 + $0x10] sm:$0xff] (!%p192_p9)  ;;  %v742_v3 = vmov (!%p192_p9), 0.0|0.0   ;;  %vm743_vm0 = vmmov (!%p192_p9), 0   ;;  %v744_v6 = vmov (!%p192_p9), 0.0  }
   0xe   : > { %195 = sbr.rel (%p192_p9) target bundleno = 489 (0x1e9), region = 40  ;;  %618 = vmatprep.subr.bf16.mxu0 (!%p192_p9), %v742_v3  ;;  %v619_v4 = vpack.c.bf16 (!%p192_p9), %v291_v1, %v290_v0  ;;  %v293_v5 = vld [vmem:[%s936_s1 + $0x18] sm:$0xff] (!%p192_p9)  ;;  %596 = vmatprep.mubr.msk.f32.mxu0 (!%p192_p9), %vm743_vm0, %v744_v6  ;;  %s564_s13 = sshll.u32 (!%p192_p9), %s797_s22, 3  ;;  %v396_v7 = vld [vmem:[%s938_s3] sm:$0xff] (!%p192_p9)  ;;  %v397_v8 = vld [vmem:[%s938_s3 + $0x8] sm:$0xff] (!%p192_p9)  ;;  %vm233_vm1 = vcmask (!%p192_p9), 261120  }
   0xf   : > { %p220_p10 = scmp.lt.s32.totalorder (!%p192_p9), %s564_s13, 63  ;;  %624 = vmatprep.subr.bf16.mxu1 (!%p192_p9), %v742_v3  ;;  %v398_v9 = vld [vmem:[%s938_s3 + $0x10] sm:$0xff] (!%p192_p9)  ;;  %615 = vmatprep.mubr.msk.f32.mxu1 (!%p192_p9), %vm743_vm0, %v744_v6  ;;  %v622_v10 = vpack.c.bf16 (!%p192_p9), %v293_v5, %v292_v2  ;;  %v625_v11 = vpack.c.bf16 (!%p192_p9), %v397_v8, %v396_v7  ;;  %v399_v12 = vld [vmem:[%s938_s3 + $0x18] sm:$0xff] (!%p192_p9)  ;;  %v400_v14 = vld [vmem:[%s938_s3 + $0x20] sm:$0xff] (!%p192_p9)  ;;  %vm309_vm2 = vcmask (!%p192_p9), 1041409   ;;  %vm311_vm3 = vcmask (!%p192_p9), 1042434  }
  0x10   : > { %620 = vmatpush3.bf16.msra.mxu0 (!%p192_p9), %v619_v4  ;;  %v628_v13 = vpack.c.bf16 (!%p192_p9), %v399_v12, %v398_v9  ;;  %v401_v15 = vld [vmem:[%s938_s3 + $0x28] sm:$0xff] (!%p192_p9)  ;;  %vm313_vm4 = vcmask (!%p192_p9), 1043459   ;;  %vm315_vm5 = vcmask (!%p192_p9), 1044484   ;;  %vm317_vm6 = vcmask (!%p192_p9), 1045509   ;;  %s216_s26 = sand.u32 (!%p192_p9), 1, %s732_s19   ;;  %s571_s8 = sshll.u32 (!%p192_p9), %s797_s22, 7 }
  0x11   : > { %621 = vmatprep.subr.bf16.mxu0 (!%p192_p9), %v742_v3  ;;  %626 = vmatpush3.bf16.msra.mxu1 (!%p192_p9), %v625_v11  ;;  %v631_v25 = vpack.c.bf16 (!%p192_p9), %v401_v15, %v400_v14  ;;  %vm319_vm7 = vcmask (!%p192_p9), 1046534   ;;  %vm321_vm8 = vcmask (!%p192_p9), 1047559   ;;  %vm411_vm9 = vcmask (!%p192_p9), 523264   ;;  %s563_s30 = sshll.u32 (!%p192_p9), %s216_s26, 3  ;;  %s745_s22 = smov (!%p192_p9), [#allocation2]  }
  0x12   : > { %627 = vmatprep.subr.bf16.mxu1 (!%p192_p9), %v742_v3  ;;  %s218_s9 = scalar_lea.vmem (!%p192_p9), [#allocation2], %s563_s30  ;;  %s682_s16 = sshll.u32 (!%p192_p9), %s745_s22, 4  ;;  %s683_s16 = int_to_ptr.vmem [resolvable:$false] %s682_s16 }
  0x13   : > { %s500_s10 = sshll.u32 (!%p192_p9), %s218_s9, 4  ;;  %s684_s17 = scalar_lea.vmem (!%p192_p9), %s683_s16, 256  ;;  %s895_s10 = int_to_ptr.vmem [resolvable:$true] %s500_s10 }
  0x14   : > { %623 = vmatpush3.bf16.msra.mxu0 (!%p192_p9), %v622_v10  ;;  %s678_s15 = scalar_lea.vmem (!%p192_p9), %s895_s10, 128  ;;  %p685_p0 = scmp.lt.s32.totalorder (!%p192_p9), %s895_s10, %s683_s16 }
  0x15   : > { %s948_s13 = smov (!%p220_p10, %s564_s13), 63  ;;  %629 = vmatpush3.bf16.msra.mxu1 %v628_v13  ;;  %p679_p11 = scmp.ne.s32.totalorder %s895_s10, %s678_s15 }
  0x16   : > { %s565_s6 = sshll.u32 %s948_s13, 3  ;;  %630 = vmatprep.subr.bf16.mxu1 %v742_v3  ;;  %s487_s13 = scalar_lea.sflag [#allocation3], %s216_s26 }
  0x17   : > { %s223_s14 = scalar_lea.vmem %s935_s0, %s565_s6  ;;  %p680_p12 = pnand %p679_p11, %p814_p5 }
  0x18   : > { %v225_v16 = vld [vmem:[%s223_s14] sm:$0xff]  ;;  %v226_v17 = vld [vmem:[%s223_s14 + $0x8] sm:$0xff]  ;;  %v227_v18 = vld [vmem:[%s223_s14 + $0x10] sm:$0xff]  ;;  %p686_p1 = scmp.lt.s32.totalorder %s684_s17, %s678_s15 }
  0x19   : > { %v228_v19 = vld [vmem:[%s223_s14 + $0x18] sm:$0xff]  ;;  %v229_v20 = vld [vmem:[%s223_s14 + $0x20] sm:$0xff]  ;;  %v230_v21 = vld [vmem:[%s223_s14 + $0x28] sm:$0xff]  ;;  %v234_v22 = vsel %vm233_vm1, %v225_v16, 0.0  ;;  %v241_v23 = vsel %vm233_vm1, %v226_v17, 0.0  ;;  %v248_v24 = vsel %vm233_vm1, %v227_v18, 0.0  ;;  %632 = vmatpush3.bf16.msra.mxu1 %v631_v25  ;;  %p681_p13 = pneg %p680_p12 }
  0x1a   : > { %v231_v26 = vld [vmem:[%s223_s14 + $0x30] sm:$0xff]  ;;  %v232_v27 = vld [vmem:[%s223_s14 + $0x38] sm:$0xff]  ;;  %v235_v28 = vrot.slane %v234_v22, 4  ;;  %v242_v29 = vrot.slane %v241_v23, 4  ;;  %v249_v30 = vrot.slane %v248_v24, 4  ;;  %v255_v31 = vsel %vm233_vm1, %v228_v19, 0.0  ;;  %633 = vmatprep.subr.bf16.mxu1 %v742_v3  ;;  %s893_s14 = scalar_lea.hbm %s940_s5, %s571_s8  ;;  %p687_p2 = por %p686_p1, %p685_p0 }
  0x1b   : > { %v256_v32 = vrot.slane %v255_v31, 4  ;;  %v262_v33 = vsel %vm233_vm1, %v229_v20, 0.0  ;;  %v269_v34 = vsel %vm233_vm1, %v230_v21, 0.0  ;;  %v276_v35 = vsel %vm233_vm1, %v231_v26, 0.0  ;;  %v403_v25 = vld [vmem:[%s938_s3 + $0x38] sm:$0xff] }
  0x1c   : > { %v236_v36 = vadd.f32 %v235_v28, %v234_v22  ;;  %v243_v37 = vadd.f32 %v242_v29, %v241_v23  ;;  %v250_v38 = vadd.f32 %v249_v30, %v248_v24  ;;  %v263_v39 = vrot.slane %v262_v33, 4  ;;  %v402_v24 = vld [vmem:[%s938_s3 + $0x30] sm:$0xff]  ;;  %p688_p3 = pnand %p687_p2, %p681_p13 }
  0x1d   : > { %v257_v40 = vadd.f32 %v256_v32, %v255_v31  ;;  %v270_v41 = vrot.slane %v269_v34, 4  ;;  %v277_v42 = vrot.slane %v276_v35, 4  ;;  %v283_v43 = vsel %vm233_vm1, %v232_v27, 0.0  ;;  %v566_v27 = vld [vmem:[%s937_s2] ss:$0 sm:$0xff] }
  0x1e   : > { %v237_v44 = vrot.slane %v236_v36, 2  ;;  %v244_v45 = vrot.slane %v243_v37, 2  ;;  %v251_v46 = vrot.slane %v250_v38, 2  ;;  %v264_v47 = vadd.f32 %v263_v39, %v262_v33  ;;  %v568_v32 = vld [vmem:[%s939_s4] ss:$0 sm:$0xff] }
  0x1f   : > { %v258_v48 = vrot.slane %v257_v40, 2  ;;  %v271_v49 = vadd.f32 %v270_v41, %v269_v34  ;;  %v278_v50 = vadd.f32 %v277_v42, %v276_v35  ;;  %v284_v51 = vrot.slane %v283_v43, 4 }
  0x20   : > { %v238_v52 = vadd.f32 %v237_v44, %v236_v36  ;;  %v245_v53 = vadd.f32 %v244_v45, %v243_v37  ;;  %v252_v54 = vadd.f32 %v251_v46, %v250_v38  ;;  %v265_v55 = vrot.slane %v264_v47, 2 }
  0x21   : > { %v259_v56 = vadd.f32 %v258_v48, %v257_v40  ;;  %v272_v57 = vrot.slane %v271_v49, 2  ;;  %v279_v58 = vrot.slane %v278_v50, 2  ;;  %v285_v59 = vadd.f32 %v284_v51, %v283_v43 }
  0x22   : > { %v239_v60 = vrot.slane %v238_v52, 1  ;;  %v246_v61 = vrot.slane %v245_v53, 1  ;;  %v253_v62 = vrot.slane %v252_v54, 1  ;;  %v266_v63 = vadd.f32 %v265_v55, %v264_v47 }
  0x23   : > { %v260_v0 = vrot.slane %v259_v56, 1  ;;  %v273_v1 = vadd.f32 %v272_v57, %v271_v49  ;;  %v280_v2 = vadd.f32 %v279_v58, %v278_v50  ;;  %v286_v3 = vrot.slane %v285_v59, 2 }
  0x24   : > { %v240_v4 = vadd.f32 %v239_v60, %v238_v52  ;;  %v247_v5 = vadd.f32 %v246_v61, %v245_v53  ;;  %v254_v6 = vadd.f32 %v253_v62, %v252_v54  ;;  %v267_v7 = vrot.slane %v266_v63, 1 }
  0x25   : > { %v261_v8 = vadd.f32 %v260_v0, %v259_v56  ;;  %v274_v9 = vrot.slane %v273_v1, 1  ;;  %v281_v10 = vrot.slane %v280_v2, 1  ;;  %v287_v11 = vadd.f32 %v286_v3, %v285_v59 }
  0x26   : > { %v268_v12 = vadd.f32 %v267_v7, %v266_v63  ;;  %v310_v13 = vsel %vm309_vm2, %v247_v5, %v240_v4  ;;  %v634_v26 = vpack.c.bf16 %v403_v25, %v402_v24 }
  0x27   : > { %v275_v14 = vadd.f32 %v274_v9, %v273_v1  ;;  %v282_v15 = vadd.f32 %v281_v10, %v280_v2  ;;  %v288_v16 = vrot.slane %v287_v11, 1  ;;  %v312_v17 = vsel %vm311_vm3, %v254_v6, %v310_v13 }
  0x28   : > { %v314_v18 = vsel %vm313_vm4, %v261_v8, %v312_v17  ;;  %635 = vmatpush3.bf16.msra.mxu1 %v634_v26 }
  0x29   : > { %v289_v19 = vadd.f32 %v288_v16, %v287_v11  ;;  %v316_v20 = vsel %vm315_vm5, %v268_v12, %v314_v18 }
  0x2a   : > { %v318_v21 = vsel %vm317_vm6, %v275_v14, %v316_v20 }
  0x2b   : > { %v320_v22 = vsel %vm319_vm7, %v282_v15, %v318_v21 }
  0x2c   : > { %v322_v23 = vsel %vm321_vm8, %v289_v19, %v320_v22 }
  0x2d   : > { %597 = vmatmul.mubr.msk.f32.vlgmr.msra.gmra.mrb[0].mxu0 %vm233_vm1, %v322_v23 }
 0x100   : > { %v391_v28 = vpop.f32.mrb[0].mxu0 }
 0x101   : > { %v392_v29 = vadd.f32 %v566_v27, %v391_v28  ;;  %v598_v30 = vpop.f32.mrb[1].mxu0 }
 0x103   : > { %v395_v31 = vmax.f32 %v392_v29, 0.0 }
 0x105   : > { %616 = vmatmul.mubr.msk.f32.vlgmr.msra.gmra.mrb[0].mxu1 %vm411_vm9, %v395_v31 }
 0x1d8   : > { %v481_v33 = vpop.f32.mrb[0].mxu1 }
 0x1d9   : > { %v482_v34 = vadd.f32 %v568_v32, %v481_v33  ;;  %v617_v35 = vpop.f32.mrb[1].mxu1 }
 0x1db   : > { %485 = vst [vmem:[%s218_s9] sm:$0xff] %v482_v34 }
 0x1dc   : > { %691 = shalt.err (!%p688_p3)
}
 0x1dd   : > { %s692_s23 = scalar_lea.hbm %s893_s14, 128  ;;  %s696_s30 = scalar_lea.hbm %s940_s5, 1024 }
 0x1de   : > { %p693_p4 = scmp.ne.s32.totalorder %s893_s14, %s692_s23  ;;  %p697_p9 = scmp.lt.u32.totalorder %s893_s14, %s940_s5 }
 0x1df   : > { %p698_p10 = scmp.lt.u32.totalorder %s696_s30, %s692_s23  ;;  %p700_p12 = scmp.lt.u32.totalorder %s692_s23, %s893_s14 }
 0x1e0   : > { %p694_p7 = pnand %p693_p4, %p814_p5 }
 0x1e1   : > { %p699_p11 = por %p698_p10, %p697_p9 }
 0x1e2   : > { %p695_p8 = pneg %p694_p7 }
 0x1e3   : > { %p701_p13 = por %p700_p12, %p699_p11 }
 0x1e5   : > { %p702_p0 = pnand %p701_p13, %p695_p8 }
 0x1e7   : > { %705 = shalt.err (!%p702_p0)
}
 0x1e8   : > { %636 = dma.vmem_to_hbm [thread:$0]  (%p814_p5), %s895_s10, 128, %s893_s14, %s487_s13  }
 0x1e9 PF: > { %p642_p1 = scmp.ge.s32.totalorder %s740_s21, 2  ;;  %s512_s8 = sand.u32 1, %s728_s18  }
 0x1ea   : > { %s513_s9 = scalar_lea.sflag [#allocation3], %s512_s8 }
 0x1eb   : > { %p639_p2 = pnand %p642_p1, %p818_p6 }
 0x1ed   : > { %723 = dma.done.wait (!%p639_p2), %s513_s9, 128  }
 0x1ee   : > { %725 = vsyncadd (!%p639_p2), %s513_s9, 4294967168  ;;  %p15_p3 = scmp.ge.s32.totalorder %s801_s24, 10   ;;  %s943_s18 = smov %s732_s19 }
 0x1ef   : > { %s944_s19 = smov %s736_s20  ;;  %s945_s20 = smov %s812_s27 }
 0x1f0   : > { %s946_s21 = smov %s801_s24  ;;  %17 = sbr.rel (!%p15_p3) target bundleno = 3 (0x3), region = 75 }
 0x1f7   :  { %518 = vsyncpa [#allocation3], 1 }
 0x1f8   :  { %520 = vsyncpa [#allocation3 + $0x1], 1 }

</bundles_post_ra>
